<compile_context>
chip_gen: v7x
topology: tpu7x:2x2x1
jax: 0.10.0
libtpu: 0.0.40
codegen_flags: <defaults>
</compile_context>

<pallas_src>
import jax
import jax.numpy as jnp
from jax.experimental import pallas as pl
from jax.experimental.pallas import tpu as pltpu


def sigmoid_cumsum_kernel(x_ref, scales2_ref, ccum_ref, slopes_ref, d2_ref, o_ref):
    # x_ref block: (N, R) -- half-row values, batch rows on the lane axis (lane-dense).
    x = x_ref[...]                       # (N, R)
    scales2 = scales2_ref[...]           # (S, 1)  scales*scales (precomputed)
    ccum = ccum_ref[...]                 # (S, 1)  cumsum(|c|)   (precomputed)
    slopes = slopes_ref[...]             # (S, 1)
    d2 = d2_ref[0]                       # SMEM scalar: d*d      (precomputed)

    # x*slope - ccum*slope == (x - ccum) * slope  (one sub + one mul on the VPU)
    logits = (x[None, :, :] - ccum[:, :, None]) * slopes[:, :, None]   # (S, N, R)
    sig = jax.nn.sigmoid(logits)                                       # EUP
    y = jnp.sum(scales2[:, :, None] * sig, axis=0) + d2                # (N, R)

    # softmax(log(y)) == y / sum(y) for y > 0.  Full (mirrored) row sum = 2 * half sum.
    denom = 2.0 * jnp.sum(y, axis=0, keepdims=True)                    # (1, R)
    o_ref[...] = y / denom               # exact normalize; lane-dense (128-wide) store


def sigmoid_model_cumsum_location(x, scales, c, slopes, d, element_size):
    """x: (element_size,) or (B, element_size). Returns (element_size,) or (B, element_size)."""
    squeeze = x.ndim == 1
    xb = x[None, :] if squeeze else x
    B = xb.shape[0]
    N = element_size // 2
    S = scales.shape[0]

    # Pack batch rows onto the lane axis, padded to a multiple of 128 lanes.
    R_BLOCK = 128
    R_pad = ((B + R_BLOCK - 1) // R_BLOCK) * R_BLOCK
    xh_t = xb[:, :N].astype(jnp.float32).T                 # (N, B)
    x_lanes = jnp.pad(xh_t, ((0, 0), (0, R_pad - B)))      # (N, R_pad); pad cols are harmless

    # Parameter-only precompute hoisted out of the kernel.
    scales2_r = (scales.astype(jnp.float32) ** 2).reshape(S, 1)
    slopes_r = slopes.astype(jnp.float32).reshape(S, 1)
    ccum_r = jnp.cumsum(jnp.abs(c.astype(jnp.float32))).reshape(S, 1)
    d2_r = (jnp.asarray(d, jnp.float32) ** 2).reshape(1)

    out_half_t = pl.pallas_call(
        sigmoid_cumsum_kernel,
        out_shape=jax.ShapeDtypeStruct((N, R_pad), jnp.float32),
        grid=(R_pad // R_BLOCK,),
        in_specs=[
            pl.BlockSpec((N, R_BLOCK), lambda r: (0, r)),
            pl.BlockSpec((S, 1), lambda r: (0, 0)),
            pl.BlockSpec((S, 1), lambda r: (0, 0)),
            pl.BlockSpec((S, 1), lambda r: (0, 0)),
            pl.BlockSpec((1,), lambda r: (0,),
                         memory_space=pltpu.MemorySpace.SMEM),
        ],
        out_specs=pl.BlockSpec((N, R_BLOCK), lambda r: (0, r)),
        compiler_params=pltpu.CompilerParams(
            dimension_semantics=("parallel",)),
    )(x_lanes, scales2_r, ccum_r, slopes_r, d2_r)

    # Wrapper-side layout plumbing: drop lane padding, restore (B, N),
    # and build cat(s, flip(s)) -> (B, 2N).
    half = out_half_t[:, :B].T                              # (B, N)
    out = jnp.concatenate([half, half[:, ::-1]], axis=1)    # (B, 2N)
    return out[0] if squeeze else out


def reference(x, scales, c, slopes, d, element_size):
    """Pure-JAX replica of the PyTorch forward (for verification)."""
    scales2 = scales * scales
    c_cum = jnp.cumsum(jnp.abs(c))
    d2 = d * d
    xh = x[: element_size // 2]
    t = xh[:, None] * slopes[None, :] - c_cum * slopes
    t = jax.nn.sigmoid(t)
    t = scales2 * t
    t = jnp.sum(t, axis=1)
    t = t + d2
    t = jnp.concatenate([t, t[::-1]])
    t = jnp.log(t)
    return jax.nn.softmax(t, axis=0)


if __name__ == "__main__":
    # Module config (synthetic, deterministic): args.sig_num=32, args.random_init=True,
    # element_size=16, range_begin=8.0, slopes = sig_num * [10], d = 10.
    element_size = 16
    sig_num = 32
    range_begin = 8.0
    batch = 4  # multiple problem instances in a single pallas_call / single grid step

    key = jax.random.PRNGKey(0)
    k_x, k_s = jax.random.split(key)

    xb = jax.random.normal(k_x, (batch, element_size), dtype=jnp.float32)
    scales = jax.random.uniform(k_s, (sig_num,), dtype=jnp.float32)      # torch.rand init
    slopes = jnp.full((sig_num,), 10.0, dtype=jnp.float32)
    c = jnp.full((sig_num,), range_begin / sig_num, dtype=jnp.float32)
    d = jnp.float32(10.0)

    out_b = jax.block_until_ready(
        sigmoid_model_cumsum_location(xb, scales, c, slopes, d, element_size))
    assert out_b.shape == (batch, element_size)

    for i in range(batch):
        ref = jax.block_until_ready(
            reference(xb[i], scales, c, slopes, d, element_size))
        assert jnp.allclose(out_b[i], ref, rtol=2e-3, atol=1e-6), (i, out_b[i], ref)

    # Single-vector path (module semantics: forward takes one x vector).
    out_1 = jax.block_until_ready(
        sigmoid_model_cumsum_location(xb[0], scales, c, slopes, d, element_size))
    assert out_1.shape == (element_size,)
    assert jnp.allclose(out_1, out_b[0], rtol=1e-5, atol=1e-7)

    print("KERNEL_OK")
</pallas_src>

<mosaic_0001>
module attributes {stable_mosaic.version = 11 : i64} {
  func.func @sigmoid_cumsum_kernel(%arg0: i32, %arg1: memref<8x128xf32, #tpu.memory_space<vmem>>, %arg2: memref<32x1xf32, #tpu.memory_space<vmem>>, %arg3: memref<32x1xf32, #tpu.memory_space<vmem>>, %arg4: memref<32x1xf32, #tpu.memory_space<vmem>>, %arg5: memref<1xf32, #tpu.memory_space<smem>>, %arg6: memref<8x128xf32, #tpu.memory_space<vmem>>) attributes {dimension_semantics = [#tpu.dimension_semantics<parallel>], iteration_bounds = array<i64: 1>, scalar_prefetch = 0 : i64, scratch_operands = 0 : i64, tpu.core_type = #tpu.core_type<tc>, window_params = [{transform_indices = @transform_0, window_bounds = array<i64: 8, 128>}, {pipeline_mode = #tpu.pipeline_mode<synchronous>, transform_indices = @transform_1, window_bounds = array<i64: 32, 1>}, {pipeline_mode = #tpu.pipeline_mode<synchronous>, transform_indices = @transform_2, window_bounds = array<i64: 32, 1>}, {pipeline_mode = #tpu.pipeline_mode<synchronous>, transform_indices = @transform_3, window_bounds = array<i64: 32, 1>}, {transform_indices = @transform_4, window_bounds = array<i64: 1>}, {transform_indices = @transform_5, window_bounds = array<i64: 8, 128>}]} {
    %c0 = arith.constant 0 : index
    %c0_0 = arith.constant 0 : index
    %0 = vector.load %arg1[%c0, %c0_0] : memref<8x128xf32, #tpu.memory_space<vmem>>, vector<8x128xf32>
    %c0_1 = arith.constant 0 : index
    %c0_2 = arith.constant 0 : index
    %1 = vector.load %arg2[%c0_1, %c0_2] : memref<32x1xf32, #tpu.memory_space<vmem>>, vector<32x1xf32>
    %c0_3 = arith.constant 0 : index
    %c0_4 = arith.constant 0 : index
    %2 = vector.load %arg3[%c0_3, %c0_4] : memref<32x1xf32, #tpu.memory_space<vmem>>, vector<32x1xf32>
    %c0_5 = arith.constant 0 : index
    %c0_6 = arith.constant 0 : index
    %3 = vector.load %arg4[%c0_5, %c0_6] : memref<32x1xf32, #tpu.memory_space<vmem>>, vector<32x1xf32>
    %c0_7 = arith.constant 0 : index
    %4 = memref.load %arg5[%c0_7] : memref<1xf32, #tpu.memory_space<smem>>
    %5 = vector.shape_cast %0 : vector<8x128xf32> to vector<1x8x128xf32>
    %6 = vector.shape_cast %2 : vector<32x1xf32> to vector<32x1x1xf32>
    %7 = vector.broadcast %5 : vector<1x8x128xf32> to vector<32x8x128xf32>
    %8 = vector.broadcast %6 : vector<32x1x1xf32> to vector<32x8x128xf32>
    %9 = arith.subf %7, %8 : vector<32x8x128xf32>
    %10 = vector.shape_cast %3 : vector<32x1xf32> to vector<32x1x1xf32>
    %11 = vector.broadcast %10 : vector<32x1x1xf32> to vector<32x8x128xf32>
    %12 = arith.mulf %9, %11 : vector<32x8x128xf32>
    %13 = arith.negf %12 : vector<32x8x128xf32>
    %14 = math.exp %13 : vector<32x8x128xf32>
    %cst = arith.constant 1.000000e+00 : f32
    %15 = vector.broadcast %cst : f32 to vector<32x8x128xf32>
    %16 = arith.addf %15, %14 : vector<32x8x128xf32>
    %17 = arith.divf %15, %16 : vector<32x8x128xf32>
    %18 = vector.shape_cast %1 : vector<32x1xf32> to vector<32x1x1xf32>
    %19 = vector.broadcast %18 : vector<32x1x1xf32> to vector<32x8x128xf32>
    %20 = arith.mulf %19, %17 : vector<32x8x128xf32>
    %cst_8 = arith.constant dense<0.000000e+00> : vector<8x128xf32>
    %21 = vector.multi_reduction <add>, %20, %cst_8 [0] : vector<32x8x128xf32> to vector<8x128xf32>
    %22 = vector.broadcast %4 : f32 to vector<8x128xf32>
    %23 = arith.addf %21, %22 : vector<8x128xf32>
    %cst_9 = arith.constant dense<0.000000e+00> : vector<128xf32>
    %24 = vector.multi_reduction <add>, %23, %cst_9 [0] : vector<8x128xf32> to vector<128xf32>
    %25 = vector.shape_cast %24 : vector<128xf32> to vector<1x128xf32>
    %cst_10 = arith.constant 2.000000e+00 : f32
    %26 = vector.broadcast %cst_10 : f32 to vector<1x128xf32>
    %27 = arith.mulf %26, %25 : vector<1x128xf32>
    %28 = vector.broadcast %27 : vector<1x128xf32> to vector<8x128xf32>
    %29 = arith.divf %23, %28 : vector<8x128xf32>
    %c0_11 = arith.constant 0 : index
    %c0_12 = arith.constant 0 : index
    %30 = vector.load %arg6[%c0_11, %c0_12] : memref<8x128xf32, #tpu.memory_space<vmem>>, vector<8x128xf32>
    tpu.vector_store %arg6[%c0_11, %c0_12], %29 {strides = array<i32>} : memref<8x128xf32, #tpu.memory_space<vmem>>, vector<8x128xf32>,
    return
  }
  func.func @transform_0(%arg0: i32) -> (i32, i32) {
    %c0_i32 = arith.constant 0 : i32
    %c0_i32_0 = arith.constant 0 : i32
    return %c0_i32, %arg0 : i32, i32
  }
  func.func @transform_1(%arg0: i32) -> (i32, i32) {
    %c0_i32 = arith.constant 0 : i32
    %c0_i32_0 = arith.constant 0 : i32
    %c0_i32_1 = arith.constant 0 : i32
    return %c0_i32, %c0_i32_0 : i32, i32
  }
  func.func @transform_2(%arg0: i32) -> (i32, i32) {
    %c0_i32 = arith.constant 0 : i32
    %c0_i32_0 = arith.constant 0 : i32
    %c0_i32_1 = arith.constant 0 : i32
    return %c0_i32, %c0_i32_0 : i32, i32
  }
  func.func @transform_3(%arg0: i32) -> (i32, i32) {
    %c0_i32 = arith.constant 0 : i32
    %c0_i32_0 = arith.constant 0 : i32
    %c0_i32_1 = arith.constant 0 : i32
    return %c0_i32, %c0_i32_0 : i32, i32
  }
  func.func @transform_4(%arg0: i32) -> i32 {
    %c0_i32 = arith.constant 0 : i32
    %c0_i32_0 = arith.constant 0 : i32
    return %c0_i32 : i32
  }
  func.func @transform_5(%arg0: i32) -> (i32, i32) {
    %c0_i32 = arith.constant 0 : i32
    %c0_i32_0 = arith.constant 0 : i32
    return %c0_i32, %arg0 : i32, i32
  }
}

</mosaic_0001>

<bundles_post_ra>
// kernel: tpu_custom_call.1
= control target key start
LH: loop header
LB: loop body
LE: loop exit
PB: predicated region body
PF: predicated region fallthrough
CT: control target
= control target key end

     0   :  { %v44_v0 = vlaneseq  ;;  %v1952_v1 = vmov 0   ;;  %v1953_v2 = vmov 1966171168   ;;  %s2880_s0 = inlined_call_operand.vmem [shape: f32[8,128], index: 0, kind: input, shape index: {}]   ;;  %s2881_s1 = inlined_call_operand.vmem [shape: f32[32,1], index: 1, kind: input, shape index: {}]   ;;  %s2882_s2 = inlined_call_operand.vmem [shape: f32[32,1], index: 2, kind: input, shape index: {}]   ;;  %s2883_s3 = inlined_call_operand.vmem [shape: f32[32,1], index: 3, kind: input, shape index: {}]   ;;  %s2884_s4 = inlined_call_operand.<no memory space> [shape: f32[1], index: 4, kind: input, shape index: {}]   ;;  %s2885_s5 = inlined_call_operand.hbm [shape: f32[8,128], index: 5, kind: output, shape index: {}]  }
   0x1   :  { %1784 = vset.pattern.permute.xlu0 %v1952_v1  ;;  %v42_v3 = vunpack.c.l.s4 %v1953_v2  ;;  %1785 = vset.pattern.permute.xlu1 %v1952_v1  ;;  %v27_v4 = vld [vmem:[%s2882_s2] sm:$0xff]  ;;  %v28_v8 = vld [vmem:[%s2882_s2 + $0x8] sm:$0xff] }
   0x2   :  { %v45_v5 = vshrl.u32 %v44_v0, 7  ;;  %v40_v7 = vcombine.high %v27_v4, %v27_v4 }
   0x3   :  { %v43_v6 = vunpack.c.0.s8 %v42_v3 }
   0x4   :  { %11 = vsyncpa [#allocation4], 0  ;;  %v89_v9 = vcombine.high %v28_v8, %v28_v8  ;;  %v1994_v12 = vsub.s32 0, %v45_v5  ;;  %v29_v15 = vld [vmem:[%s2882_s2 + $0x10] sm:$0xff]  ;;  %v30_v22 = vld [vmem:[%s2882_s2 + $0x18] sm:$0xff]  ;;  %s1954_s17 = smov [#allocation3]  }
   0x5   :  { %v1991_v10 = vsub.s32 %v43_v6, %v45_v5  ;;  %v138_v17 = vcombine.high %v29_v15, %v29_v15  ;;  %v2010_v23 = vld [vmem:[%s2883_s3] sm:$0xff]  ;;  %v2015_v24 = vld [vmem:[%s2883_s3 + $0x8] sm:$0xff]  ;;  %v187_v26 = vcombine.high %v30_v22, %v30_v22  ;;  %v2035_v41 = vld [vmem:[%s2883_s3 + $0x10] sm:$0xff]  ;;  %s1741_s18 = sshll.u32 %s1954_s17, 4  ;;  %s1742_s18 = int_to_ptr.vmem [resolvable:$true] %s1741_s18 }
   0x6   :  { %v528_v27 = vcombine.high %v2010_v23, %v2010_v23  ;;  %v577_v28 = vcombine.high %v2015_v24, %v2015_v24  ;;  %v2040_v42 = vld [vmem:[%s2881_s1] sm:$0xff]  ;;  %v626_v45 = vcombine.high %v2035_v41, %v2035_v41  ;;  %s1928_s19 = scalar_lea.vmem %s1742_s18, 128  ;;  %p1933_p1 = scmp.lt.s32.totalorder %s1742_s18, %s1742_s18 }
   0x7   :  { %v47_v11 = vrot.slane %v27_v4, %v1991_v10  ;;  %v54_v13 = vrot.slane %v40_v7, %v1991_v10  ;;  %v96_v14 = vrot.slane %v28_v8, %v1991_v10  ;;  %v103_v16 = vrot.slane %v89_v9, %v1991_v10  ;;  %p1929_p0 = scmp.ne.s32.totalorder %s1742_s18, %s1928_s19  ;;  %p1934_p2 = scmp.lt.s32.totalorder %s1928_s19, %s1928_s19 }
   0x8   :  { %v145_v32 = vrot.slane %v29_v15, %v1991_v10  ;;  %v152_v40 = vrot.slane %v138_v17, %v1991_v10  ;;  %v194_v44 = vrot.slane %v30_v22, %v1991_v10  ;;  %v1208_v46 = vcombine.high %v2040_v42, %v2040_v42 }
   0x9   :  { %v63_v18 = vrot.slane %v47_v11, %v1991_v10  ;;  %v55_v19 = vcombine.high %v47_v11, %v47_v11  ;;  %v70_v20 = vrot.slane %v54_v13, %v1991_v10  ;;  %v56_v21 = vcombine.high %v54_v13, %v54_v13  ;;  %p1935_p3 = por %p1934_p2, %p1933_p1 }
   0xa   :  { %v104_v25 = vcombine.high %v96_v14, %v96_v14  ;;  %v2027_v36 = vrot.slane %v96_v14, %v1991_v10  ;;  %v105_v39 = vcombine.high %v103_v16, %v103_v16  ;;  %v2051_v49 = vrot.slane %v103_v16, %v1991_v10 }
   0xb   :  { %v239_v29 = vrot.slane %v63_v18, %v1994_v12  ;;  %v85_v30 = vcombine.high %v63_v18, %v63_v18  ;;  %v84_v31 = vrot.slane %v56_v21, %v1991_v10  ;;  %v77_v33 = vrot.slane %v55_v19, %v1991_v10  ;;  %p1936_p4 = pnand %p1935_p3, %p1929_p0 }
   0xc   :  { %v126_v34 = vrot.slane %v104_v25, %v1991_v10  ;;  %v86_v35 = vcombine.high %v70_v20, %v70_v20  ;;  %v255_v38 = vrot.slane %v70_v20, %v1994_v12  ;;  %v134_v48 = vcombine.high %v2027_v36, %v2027_v36 }
   0xd   :  { %365 = vperm.xlu0 %1784, %v239_v29   ;;  %v247_v37 = vrot.slane %v85_v30, %v1994_v12  ;;  %v88_v43 = vcombine.high %v84_v31, %v84_v31  ;;  %v259_v47 = vrot.slane %v84_v31, %v1994_v12  ;;  %v2054_v50 = vrot.slane %v187_v26, %v1991_v10 }
   0xe   :  { %v243_v51 = vrot.slane %v77_v33, %v1994_v12  ;;  %v275_v52 = vrot.slane %v126_v34, %v1994_v12  ;;  %v263_v53 = vrot.slane %v86_v35, %v1994_v12  ;;  %v271_v54 = vrot.slane %v2027_v36, %v1994_v12 }
   0xf   :  { %373 = vperm.xlu1 %1785, %v247_v37   ;;  %v87_v55 = vcombine.high %v77_v33, %v77_v33  ;;  %v2062_v56 = vrot.slane %v105_v39, %v1991_v10  ;;  %v153_v57 = vcombine.high %v145_v32, %v145_v32  ;;  %v154_v58 = vcombine.high %v152_v40, %v152_v40 }
  0x10   :  { %v267_v59 = vrot.slane %v88_v43, %v1994_v12  ;;  %v136_v60 = vcombine.high %v126_v34, %v126_v34  ;;  %v135_v61 = vcombine.high %v2051_v49, %v2051_v49  ;;  %v2068_v62 = vrot.slane %v145_v32, %v1991_v10 }
  0x11   :  { %381 = vperm.xlu0 %1784, %v255_v38   ;;  %v279_v63 = vrot.slane %v134_v48, %v1994_v12  ;;  %v137_v0 = vcombine.high %v2062_v56, %v2062_v56  ;;  %v2074_v1 = vrot.slane %v153_v57, %v1991_v10  ;;  %v2077_v2 = vrot.slane %v152_v40, %v1991_v10 }
  0x12   :  { %v287_v3 = vrot.slane %v2051_v49, %v1994_v12  ;;  %v183_v4 = vcombine.high %v2068_v62, %v2068_v62  ;;  %v2084_v5 = vrot.slane %v154_v58, %v1991_v10  ;;  %v202_v6 = vcombine.high %v194_v44, %v194_v44 }
  0x13   :  { %385 = vperm.xlu1 %1785, %v259_v47   ;;  %v251_v7 = vrot.slane %v87_v55, %v1994_v12  ;;  %v185_v8 = vcombine.high %v2074_v1, %v2074_v1  ;;  %v184_v9 = vcombine.high %v2077_v2, %v2077_v2  ;;  %v2092_v11 = vrot.slane %v194_v44, %v1991_v10 }
  0x14   :  { %v283_v13 = vrot.slane %v136_v60, %v1994_v12  ;;  %v291_v14 = vrot.slane %v2062_v56, %v1994_v12  ;;  %v2098_v15 = vrot.slane %v135_v61, %v1994_v12  ;;  %v303_v16 = vrot.slane %v2068_v62, %v1994_v12 }
  0x15   :  { %369 = vperm.xlu0 %1784, %v243_v51   ;;  %v2103_v17 = vrot.slane %v137_v0, %v1994_v12  ;;  %v319_v18 = vrot.slane %v2077_v2, %v1994_v12  ;;  %v186_v19 = vcombine.high %v2084_v5, %v2084_v5  ;;  %v2110_v20 = vrot.slane %v202_v6, %v1991_v10 }
  0x16   :  { %v307_v21 = vrot.slane %v2074_v1, %v1994_v12  ;;  %v2115_v22 = vrot.slane %v183_v4, %v1994_v12  ;;  %v323_v25 = vrot.slane %v2084_v5, %v1994_v12  ;;  %v535_v26 = vrot.slane %v2010_v23, %v1991_v10  ;;  %v26_v5 = vld [vmem:[%s2881_s1 + $0x18] sm:$0xff] }
  0x17   :  { %401 = vperm.xlu1 %1785, %v275_v52   ;;  %v2122_v29 = vrot.slane %v185_v8, %v1994_v12  ;;  %v2125_v30 = vrot.slane %v184_v9, %v1994_v12  ;;  %v232_v32 = vcombine.high %v2092_v11, %v2092_v11  ;;  %v2133_v33 = vrot.slane %v2054_v50, %v1991_v10 }
  0x18   :  { %v2136_v34 = vrot.slane %v535_v26, %v1991_v10  ;;  %v543_v35 = vcombine.high %v535_v26, %v535_v26  ;;  %v542_v36 = vrot.slane %v528_v27, %v1991_v10  ;;  %v2143_v37 = vrot.slane %v186_v19, %v1994_v12 }
  0x19   :  { %389 = vperm.xlu0 %1784, %v263_v53   ;;  %v584_v40 = vrot.slane %v2015_v24, %v1991_v10 }
  0x1a   :  { %v2154_v44 = vrot.slane %v543_v35, %v1991_v10  ;;  %v573_v23 = vcombine.high %v2136_v34, %v2136_v34  ;;  %v2159_v27 = vrot.slane %v542_v36, %v1991_v10  ;;  %v544_v48 = vcombine.high %v542_v36, %v542_v36 }
  0x1b   :  { %377 = vperm.xlu1 %1785, %v251_v7   ;;  %v2164_v51 = vrot.slane %v584_v40, %v1991_v10  ;;  %v592_v52 = vcombine.high %v584_v40, %v584_v40  ;;  %v633_v7 = vrot.slane %v2035_v41, %v1991_v10 }
  0x1c   :  { %v2169_v55 = vrot.slane %v573_v23, %v1994_v12  ;;  %v575_v57 = vcombine.high %v2154_v44, %v2154_v44  ;;  %v2176_v58 = vrot.slane %v544_v48, %v1991_v10  ;;  %v574_v60 = vcombine.high %v2159_v27, %v2159_v27 }
  0x1d   :  { %397 = vperm.xlu0 %1784, %v271_v54   ;;  %v2183_v0 = vrot.slane %v592_v52, %v1991_v10  ;;  %v622_v6 = vcombine.high %v2164_v51, %v2164_v51  ;;  %v2217_v40 = vrot.slane %v633_v7, %v1991_v10  ;;  %v641_v23 = vcombine.high %v633_v7, %v633_v7  ;;  %v2249_v7 = vld [vmem:[%s2883_s3 + $0x18] sm:$0xff] }
  0x1e   :  { %v2186_v4 = vrot.slane %v575_v57, %v1994_v12  ;;  %v2199_v9 = vrot.slane %v574_v60, %v1994_v12  ;;  %v576_v19 = vcombine.high %v2176_v58, %v2176_v58  ;;  %v640_v48 = vrot.slane %v626_v45, %v1991_v10 }
  0x1f   :  { %393 = vperm.xlu1 %1785, %v267_v59   ;;  %v591_v59 = vrot.slane %v577_v28, %v1991_v10  ;;  %v2206_v35 = vrot.slane %v622_v6, %v1994_v12  ;;  %v624_v24 = vcombine.high %v2183_v0, %v2183_v0  ;;  %v2239_v45 = vrot.slane %v641_v23, %v1991_v10 }
  0x20   :  { %v2214_v36 = vrot.slane %v576_v19, %v1994_v12  ;;  %v671_v6 = vcombine.high %v2217_v40, %v2217_v40 }
  0x21   :  { %405 = vperm.xlu0 %1784, %v279_v63   ;;  %v2211_v28 = vrot.slane %v591_v59, %v1991_v10  ;;  %v593_v63 = vcombine.high %v591_v59, %v591_v59  ;;  %v2224_v52 = vrot.slane %v624_v24, %v1994_v12  ;;  %v2244_v59 = vrot.slane %v640_v48, %v1991_v10 }
  0x22   :  { %v642_v24 = vcombine.high %v640_v48, %v640_v48  ;;  %v2269_v41 = vrot.slane %v671_v6, %v1994_v12  ;;  %v1215_v48 = vrot.slane %v2040_v42, %v1991_v10 }
  0x23   :  { %409 = vperm.xlu1 %1785, %v283_v13   ;;  %v2229_v13 = vrot.slane %v593_v63, %v1991_v10  ;;  %v623_v60 = vcombine.high %v2211_v28, %v2211_v28  ;;  %v2261_v63 = vld [vmem:[%s2881_s1 + $0x8] sm:$0xff]  ;;  %v672_v56 = vcombine.high %v2244_v59, %v2244_v59 }
  0x24   :  { %v2279_v57 = vrot.slane %v642_v24, %v1991_v10  ;;  %v1264_v24 = vrot.slane %v2261_v63, %v1991_v10  ;;  %v2309_v42 = vrot.slane %v1215_v48, %v1991_v10  ;;  %v1257_v39 = vcombine.high %v2261_v63, %v2261_v63 }
  0x25   :  { %413 = vperm.xlu0 %1784, %v287_v3   ;;  %v2254_v3 = vrot.slane %v623_v60, %v1994_v12  ;;  %v625_v19 = vcombine.high %v2229_v13, %v2229_v13  ;;  %v673_v60 = vcombine.high %v2239_v45, %v2239_v45  ;;  %v2300_v26 = vrot.slane %v672_v56, %v1994_v12 }
  0x26   :  { %v2320_v54 = vrot.slane %v1264_v24, %v1991_v10  ;;  %v1272_v53 = vcombine.high %v1264_v24, %v1264_v24 }
  0x27   :  { %417 = vperm.xlu1 %1785, %v291_v14   ;;  %v2276_v49 = vrot.slane %v625_v19, %v1994_v12  ;;  %v682_v14 = vrot.slane %v2249_v7, %v1991_v10  ;;  %v2287_v6 = vrot.slane %v673_v60, %v1994_v12  ;;  %v1222_v19 = vrot.slane %v1208_v46, %v1991_v10 }
  0x28   :  { %v1223_v46 = vcombine.high %v1215_v48, %v1215_v48 }
  0x29   :  { %421 = vperm.xlu0 %1784, %v2098_v15   ;;  %v674_v15 = vcombine.high %v2279_v57, %v2279_v57  ;;  %v2305_v60 = vrot.slane %v682_v14, %v1991_v10  ;;  %v2312_v61 = vrot.slane %v1222_v19, %v1991_v10  ;;  %v1224_v8 = vcombine.high %v1222_v19, %v1222_v19 }
  0x2a   :  { %v2328_v48 = vrot.slane %v1223_v46, %v1991_v10  ;;  %v1253_v19 = vcombine.high %v2309_v42, %v2309_v42 }
  0x2b   :  { %425 = vperm.xlu1 %1785, %v2103_v17   ;;  %v2315_v23 = vrot.slane %v674_v15, %v1994_v12  ;;  %v2335_v56 = vrot.slane %v1224_v8, %v1991_v10  ;;  %v1254_v24 = vcombine.high %v2312_v61, %v2312_v61  ;;  %v1302_v17 = vcombine.high %v2320_v54, %v2320_v54 }
  0x2c   :  { %v2350_v15 = vrot.slane %v1253_v19, %v1994_v12  ;;  %v1255_v8 = vcombine.high %v2328_v48, %v2328_v48  ;;  %v25_v19 = vld [vmem:[%s2881_s1 + $0x10] sm:$0xff] }
  0x2d   :  { %429 = vperm.xlu0 %1784, %v303_v16   ;;  %v2342_v16 = vrot.slane %v1272_v53, %v1991_v10  ;;  %v2359_v62 = vrot.slane %v1254_v24, %v1994_v12  ;;  %v1256_v1 = vcombine.high %v2335_v56, %v2335_v56  ;;  %v2373_v53 = vrot.slane %v1302_v17, %v1994_v12 }
  0x2e   :  { %v2370_v46 = vrot.slane %v1255_v8, %v1994_v12  ;;  %v690_v24 = vcombine.high %v682_v14, %v682_v14  ;;  %v2391_v14 = vrot.slane %v232_v32, %v1994_v12  ;;  %v1306_v47 = vcombine.high %v25_v19, %v25_v19 }
  0x2f   :  { %433 = vperm.xlu1 %1785, %v307_v21   ;;  %v1304_v43 = vcombine.high %v2342_v16, %v2342_v16  ;;  %v2378_v38 = vrot.slane %v1256_v1, %v1994_v12  ;;  %v720_v21 = vcombine.high %v2305_v60, %v2305_v60  ;;  %v1313_v1 = vrot.slane %v25_v19, %v1991_v10 }
  0x30   :  { %v2394_v17 = vrot.slane %v690_v24, %v1991_v10 }
  0x31   :  { %437 = vperm.xlu0 %1784, %v2115_v22   ;;  %v675_v22 = vcombine.high %v2249_v7, %v2249_v7  ;;  %v2397_v8 = vrot.slane %v1304_v43, %v1994_v12  ;;  %v2401_v63 = vrot.slane %v720_v21, %v1994_v12  ;;  %v1271_v7 = vrot.slane %v1257_v39, %v1991_v10 }
  0x32   :  { %v722_v43 = vcombine.high %v2394_v17, %v2394_v17  ;;  %v2413_v24 = vrot.slane %v1313_v1, %v1991_v10  ;;  %v1321_v21 = vcombine.high %v1313_v1, %v1313_v1 }
  0x33   :  { %441 = vperm.xlu1 %1785, %v2122_v29   ;;  %v689_v29 = vrot.slane %v675_v22, %v1991_v10  ;;  %v2416_v31 = vrot.slane %v1271_v7, %v1991_v10  ;;  %v1273_v39 = vcombine.high %v1271_v7, %v1271_v7 }
  0x34   :  { %2892 = vst [vmem:[#allocation6_spill] sm:$0xff] %v2413_v24  ;;  %v2425_v2 = vrot.slane %v722_v43, %v1994_v12  ;;  %v2430_v1 = vrot.slane %v1321_v21, %v1991_v10  ;;  %v1351_v7 = vcombine.high %v2413_v24, %v2413_v24 }
  0x35   :  { %445 = vperm.xlu0 %1784, %v319_v18   ;;  %v2419_v19 = vrot.slane %v689_v29, %v1991_v10  ;;  %v691_v22 = vcombine.high %v689_v29, %v689_v29  ;;  %v2437_v29 = vrot.slane %v1273_v39, %v1991_v10 }
  0x36   :  { %2893 = vst [vmem:[#allocation7_spill] sm:$0xff] %v2430_v1  ;;  %v2452_v39 = vrot.slane %v1351_v7, %v1994_v12  ;;  %v1353_v24 = vcombine.high %v2430_v1, %v2430_v1 }
  0x37   :  { %449 = vperm.xlu1 %1785, %v323_v25   ;;  %v1303_v25 = vcombine.high %v2416_v31, %v2416_v31  ;;  %v2445_v43 = vrot.slane %v691_v22, %v1991_v10  ;;  %v721_v21 = vcombine.high %v2419_v19, %v2419_v19  ;;  %v1305_v22 = vcombine.high %v2437_v29, %v2437_v29 }
  0x38   :  { %2895 = vst [vmem:[#allocation9_spill] sm:$0xff] %v2452_v39  ;;  %v351_v39 = vrot.slane %v2133_v33, %v1994_v12  ;;  %v2481_v1 = vrot.slane %v1353_v24, %v1994_v12 }
  0x39   :  { %453 = vperm.xlu0 %1784, %v2125_v30   ;;  %2894 = vst [vmem:[#allocation8_spill] sm:$0xff] %v2445_v43  ;;  %v2460_v30 = vrot.slane %v1303_v25, %v1994_v12  ;;  %v2470_v18 = vrot.slane %v721_v21, %v1994_v12  ;;  %v723_v32 = vcombine.high %v2445_v43, %v2445_v43 }
  0x3a   :  { %v1320_v25 = vrot.slane %v1306_v47, %v1991_v10  ;;  %2899 = vst [vmem:[#allocation13_spill] sm:$0xff] %v2481_v1  ;;  %v2900_v21 = vrot.slane %v2092_v11, %v1994_v12  ;;  %v1355_v43 = vcombine.high %v26_v5, %v26_v5  ;;  %v2903_v1 = vcombine.high %v2054_v50, %v2054_v50 }
  0x3b   :  { %2896 = vst [vmem:[#allocation10_spill] sm:$0xff] %v2460_v30  ;;  %457 = vperm.xlu1 %1785, %v2143_v37   ;;  %2897 = vst [vmem:[#allocation11_spill] sm:$0xff] %v2470_v18  ;;  %v2478_v30 = vrot.slane %v1305_v22, %v1994_v12  ;;  %v1362_v37 = vrot.slane %v26_v5, %v1991_v10  ;;  %v2488_v7 = vrot.slane %v723_v32, %v1994_v12 }
  0x3c   :  { %v2491_v47 = vrot.slane %v1320_v25, %v1991_v10  ;;  %v1322_v18 = vcombine.high %v1320_v25, %v1320_v25  ;;  %v2902_v22 = vcombine.high %v2110_v20, %v2110_v20  ;;  %v1369_v50 = vrot.slane %v1355_v43, %v1991_v10 }
  0x3d   :  { %2898 = vst [vmem:[#allocation12_spill] sm:$0xff] %v2478_v30  ;;  %461 = vperm.xlu0 %1784, %v2900_v21   ;;  %v231_v30 = vrot.slane %v2903_v1, %v1991_v10  ;;  %v2502_v11 = vrot.slane %v1362_v37, %v1991_v10  ;;  %v1370_v32 = vcombine.high %v1362_v37, %v1362_v37 }
  0x3e   :  { %2901 = vst [vmem:[#allocation14_spill] sm:$0xff] %v2491_v47  ;;  %v347_v24 = vrot.slane %v2902_v22, %v1994_v12  ;;  %v2905_v21 = vrot.slane %v2110_v20, %v1994_v12  ;;  %v2510_v25 = vrot.slane %v1322_v18, %v1991_v10  ;;  %v1352_v22 = vcombine.high %v2491_v47, %v2491_v47 }
  0x3f   :  { %2904 = vst [vmem:[#allocation15_spill] sm:$0xff] %v2502_v11  ;;  %v233_v1 = vcombine.high %v2133_v33, %v2133_v33  ;;  %v2520_v20 = vrot.slane %v1370_v32, %v1991_v10  ;;  %v2533_v43 = vrot.slane %v1369_v50, %v1991_v10  ;;  %v235_v18 = vcombine.high %v231_v30, %v231_v30 }
  0x40   :  { %465 = vperm.xlu1 %1785, %v2905_v21   ;;  %2906 = vst [vmem:[#allocation16_spill] sm:$0xff] %v2510_v25  ;;  %v1400_v21 = vcombine.high %v2502_v11, %v2502_v11  ;;  %v2528_v5 = vrot.slane %v1352_v22, %v1994_v12  ;;  %v1354_v33 = vcombine.high %v2510_v25, %v2510_v25 }
  0x41   :  { %469 = vperm.xlu0 %1784, %v2391_v14   ;;  %v1402_v14 = vcombine.high %v2520_v20, %v2520_v20  ;;  %v1371_v11 = vcombine.high %v1369_v50, %v1369_v50  ;;  %v355_v22 = vrot.slane %v231_v30, %v1994_v12  ;;  %v1519_v25 = vrot.slane %v2533_v43, %v1994_v12 }
  0x42   :  { %2907 = vst [vmem:[#allocation17_spill] sm:$0xff] %v2528_v5  ;;  %v2538_v37 = vrot.slane %v1400_v21, %v1994_v12  ;;  %v2544_v5 = vrot.slane %v1354_v33, %v1994_v12  ;;  %v359_v32 = vrot.slane %v233_v1, %v1994_v12  ;;  %v363_v50 = vrot.slane %v235_v18, %v1994_v12 }
  0x43   :  { %v2549_v47 = vrot.slane %v1402_v14, %v1994_v12  ;;  %v2552_v21 = vrot.slane %v1371_v11, %v1991_v10  ;;  %v2909_v11 = vrot.slane %v2154_v44, %v1994_v12  ;;  %v2910_v1 = vrot.slane %v2159_v27, %v1994_v12 }
  0x44   :  { %473 = vperm.xlu1 %1785, %v347_v24   ;;  %v1401_v24 = vcombine.high %v2533_v43, %v2533_v43  ;;  %v2911_v18 = vrot.slane %v2176_v58, %v1994_v12  ;;  %v2913_v44 = vrot.slane %v2183_v0, %v1994_v12  ;;  %v2914_v27 = vrot.slane %v2211_v28, %v1994_v12 }
  0x45   :  { %477 = vperm.xlu0 %1784, %v351_v39   ;;  %v1523_v30 = vrot.slane %v2552_v21, %v1994_v12  ;;  %v1403_v14 = vcombine.high %v2552_v21, %v2552_v21  ;;  %v2908_v39 = vrot.slane %v2136_v34, %v1994_v12  ;;  %v2912_v34 = vrot.slane %v2164_v51, %v1994_v12 }
  0x46   :  { %v2561_v33 = vrot.slane %v1401_v24, %v1994_v12  ;;  %v2916_v51 = vrot.slane %v2217_v40, %v1994_v12  ;;  %v2917_v58 = vrot.slane %v2239_v45, %v1994_v12  ;;  %v2918_v0 = vrot.slane %v2244_v59, %v1994_v12 }
  0x47   :  { %v2566_v10 = vrot.slane %v1403_v14, %v1994_v12  ;;  %v2922_v28 = vrot.slane %v2328_v48, %v1994_v12  ;;  %v2940_v14 = vld [vmem:[#allocation9_spill] sm:$0xff] }
  0x48   :  { %481 = vperm.xlu1 %1785, %v355_v22   ;;  %v2938_v22 = vld [vmem:[#allocation7_spill] sm:$0xff] }
  0x49   :  { %485 = vperm.xlu0 %1784, %v359_v32   ;;  %v2939_v24 = vrot.slane %v2938_v22, %v1994_v12 }
  0x4c   :  { %489 = vperm.xlu1 %1785, %v363_v50  }
  0x4d   :  { %853 = vperm.xlu0 %1784, %v2908_v39  }
  0x50   :  { %857 = vperm.xlu1 %1785, %v2909_v11   ;;  %v2941_v11 = vld [vmem:[#allocation13_spill] sm:$0xff] }
  0x51   :  { %861 = vperm.xlu0 %1784, %v2169_v55   ;;  %v2915_v55 = vrot.slane %v2229_v13, %v1994_v12 }
  0x54   :  { %865 = vperm.xlu1 %1785, %v2186_v4   ;;  %v2919_v4 = vrot.slane %v2279_v57, %v1994_v12  ;;  %v2925_v57 = vrot.slane %v2320_v54, %v1994_v12 }
  0x55   :  { %869 = vperm.xlu0 %1784, %v2910_v1  }
  0x58   :  { %873 = vperm.xlu1 %1785, %v2911_v18   ;;  %v2942_v18 = vld [vmem:[#allocation14_spill] sm:$0xff] }
  0x59   :  { %877 = vperm.xlu0 %1784, %v2199_v9   ;;  %v2920_v9 = vrot.slane %v2305_v60, %v1994_v12  ;;  %v2929_v60 = vrot.slane %v2437_v29, %v1994_v12 }
  0x5c   :  { %881 = vperm.xlu1 %1785, %v2214_v36   ;;  %v2924_v36 = vrot.slane %v2335_v56, %v1994_v12  ;;  %v2930_v56 = vrot.slane %v2419_v19, %v1994_v12  ;;  %v2936_v19 = vld [vmem:[#allocation6_spill] sm:$0xff] }
  0x5d   :  { %885 = vperm.xlu0 %1784, %v2912_v34   ;;  %v2943_v34 = vrot.slane %v2942_v18, %v1994_v12 }
  0x60   :  { %889 = vperm.xlu1 %1785, %v2913_v44   ;;  %v2944_v44 = vld [vmem:[#allocation16_spill] sm:$0xff] }
  0x61   :  { %893 = vperm.xlu0 %1784, %v2206_v35   ;;  %v2921_v35 = vrot.slane %v2309_v42, %v1994_v12 }
  0x64   :  { %897 = vperm.xlu1 %1785, %v2224_v52  }
  0x65   :  { %901 = vperm.xlu0 %1784, %v2914_v27   ;;  %v2945_v27 = vrot.slane %v2944_v44, %v1994_v12 }
  0x68   :  { %905 = vperm.xlu1 %1785, %v2915_v55  }
  0x69   :  { %909 = vperm.xlu0 %1784, %v2254_v3   ;;  %v2928_v3 = vrot.slane %v2416_v31, %v1994_v12  ;;  %v2931_v31 = vld [vmem:[#allocation10_spill] sm:$0xff] }
  0x6c   :  { %913 = vperm.xlu1 %1785, %v2276_v49  }
  0x6d   :  { %917 = vperm.xlu0 %1784, %v2916_v51   ;;  %v2946_v51 = vld [vmem:[#allocation17_spill] sm:$0xff] }
  0x70   :  { %921 = vperm.xlu1 %1785, %v2917_v58  }
  0x71   :  { %925 = vperm.xlu0 %1784, %v2269_v41  }
  0x74   :  { %929 = vperm.xlu1 %1785, %v2287_v6  }
  0x75   :  { %933 = vperm.xlu0 %1784, %v2918_v0  }
  0x78   :  { %937 = vperm.xlu1 %1785, %v2919_v4   ;;  %v2947_v4 = vld [vmem:[#allocation15_spill] sm:$0xff] }
  0x79   :  { %941 = vperm.xlu0 %1784, %v2300_v26   ;;  %v2923_v26 = vrot.slane %v2312_v61, %v1994_v12  ;;  %v2926_v61 = vrot.slane %v2342_v16, %v1994_v12 }
  0x7c   :  { %945 = vperm.xlu1 %1785, %v2315_v23  }
  0x7d   :  { %949 = vperm.xlu0 %1784, %v2920_v9   ;;  %v2948_v9 = vrot.slane %v2947_v4, %v1994_v12 }
  0x80   :  { %1533 = vperm.xlu1 %1785, %v2921_v35  }
  0x81   :  { %1537 = vperm.xlu0 %1784, %v2922_v28   ;;  %v2949_v28 = vrot.slane %v2520_v20, %v1994_v12 }
  0x84   :  { %1541 = vperm.xlu1 %1785, %v2350_v15  }
  0x85   :  { %1545 = vperm.xlu0 %1784, %v2370_v46  }
  0x88   :  { %1549 = vperm.xlu1 %1785, %v2923_v26  }
  0x89   :  { %1553 = vperm.xlu0 %1784, %v2924_v36  }
  0x8c   :  { %1557 = vperm.xlu1 %1785, %v2359_v62   ;;  %v2634_v40 = vpop.permute.xlu0 %365  ;;  %v2932_v62 = vld [vmem:[#allocation8_spill] sm:$0xff] }
  0x8d   :  { %1561 = vperm.xlu0 %1784, %v2378_v38   ;;  %v2927_v38 = vrot.slane %v2394_v17, %v1994_v12  ;;  %v2933_v16 = vrot.slane %v2932_v62, %v1994_v12 }
  0x8e   :  { %v2637_v52 = vpop.permute.xlu1 %373 }
  0x90   :  { %1565 = vperm.xlu1 %1785, %v2925_v57   ;;  %v2642_v13 = vpop.permute.xlu0 %381 }
  0x91   :  { %1569 = vperm.xlu0 %1784, %v2926_v61  }
  0x92   :  { %v2647_v41 = vpop.permute.xlu1 %385 }
  0x94   :  { %1573 = vperm.xlu1 %1785, %v2373_v53   ;;  %v2650_v45 = vpop.permute.xlu0 %369  ;;  %v2934_v53 = vld [vmem:[#allocation12_spill] sm:$0xff] }
  0x95   :  { %953 = vperm.xlu0 %1784, %v2927_v38  }
  0x96   :  { %v2655_v59 = vpop.permute.xlu1 %401 }
  0x98   :  { %1577 = vperm.xlu1 %1785, %v2397_v8   ;;  %v2658_v54 = vpop.permute.xlu0 %389  ;;  %v2935_v8 = vld [vmem:[#allocation11_spill] sm:$0xff] }
  0x99   :  { %957 = vperm.xlu0 %1784, %v2401_v63  }
  0x9a   :  { %v2661_v49 = vpop.permute.xlu1 %377 }
  0x9c   :  { %1581 = vperm.xlu1 %1785, %v2928_v3   ;;  %v2666_v23 = vpop.permute.xlu0 %397 }
  0x9d   :  { %961 = vperm.xlu0 %1784, %v2425_v2   ;;  %v2937_v2 = vrot.slane %v2936_v19, %v1994_v12 }
  0x9e   :  { %v2669_v6 = vpop.permute.xlu1 %393 }
  0xa0   :  { %1585 = vperm.xlu1 %1785, %v2929_v60   ;;  %v2674_v42 = vpop.permute.xlu0 %405 }
  0xa1   :  { %965 = vperm.xlu0 %1784, %v2930_v56  }
  0xa2   :  { %v2679_v48 = vpop.permute.xlu1 %409 }
  0xa4   :  { %1589 = vperm.xlu1 %1785, %v2931_v31   ;;  %v2682_v15 = vpop.permute.xlu0 %413 }
  0xa5   :  { %969 = vperm.xlu0 %1784, %v2933_v16  }
  0xa6   :  { %v2687_v46 = vpop.permute.xlu1 %417 }
  0xa8   :  { %1593 = vperm.xlu1 %1785, %v2934_v53   ;;  %v2690_v17 = vpop.permute.xlu0 %421 }
  0xa9   :  { %973 = vperm.xlu0 %1784, %v2935_v8  }
  0xaa   :  { %v2693_v63 = vpop.permute.xlu1 %425 }
  0xac   :  { %1597 = vperm.xlu1 %1785, %v2937_v2   ;;  %v2698_v29 = vpop.permute.xlu0 %429 }
  0xad   :  { %977 = vperm.xlu0 %1784, %v2488_v7  }
  0xae   :  { %v2701_v32 = vpop.permute.xlu1 %433 }
  0xb0   :  { %1601 = vperm.xlu1 %1785, %v2939_v24   ;;  %v2706_v50 = vpop.permute.xlu0 %437 }
  0xb1   :  { %1605 = vperm.xlu0 %1784, %v2940_v14  }
  0xb2   :  { %v2709_v39 = vpop.permute.xlu1 %441 }
  0xb4   :  { %1609 = vperm.xlu1 %1785, %v2941_v11   ;;  %v2712_v1 = vpop.permute.xlu0 %445 }
  0xb5   :  { %1613 = vperm.xlu0 %1784, %v2943_v34  }
  0xb6   :  { %v2717_v7 = vpop.permute.xlu1 %449 }
  0xb8   :  { %1617 = vperm.xlu1 %1785, %v2945_v27   ;;  %v2722_v55 = vpop.permute.xlu0 %453 }
  0xb9   :  { %1621 = vperm.xlu0 %1784, %v2946_v51  }
  0xba   :  { %v2725_v58 = vpop.permute.xlu1 %457 }
  0xbc   :  { %1625 = vperm.xlu1 %1785, %v2544_v5   ;;  %v2728_v0 = vpop.permute.xlu0 %461 }
  0xbd   :  { %1629 = vperm.xlu0 %1784, %v2948_v9  }
  0xbf   :  { %v2733_v35 = vpop.permute.xlu1 %465 }
  0xc0   :  { %1633 = vperm.xlu1 %1785, %v2949_v28   ;;  %v2738_v26 = vpop.permute.xlu0 %469 }
  0xc1   :  { %1637 = vperm.xlu0 %1784, %v2538_v37  }
  0xc3   :  { %v2741_v36 = vpop.permute.xlu1 %473 }
  0xc4   :  { %1641 = vperm.xlu1 %1785, %v2549_v47   ;;  %v2744_v5 = vpop.permute.xlu0 %477 }
  0xc5   :  { %1645 = vperm.xlu0 %1784, %v1519_v25   ;;  %v2763_v25 = vld [vmem:[%s2880_s0] sm:$0xff] }
  0xc6   :  { %v493_v60 = vsub.f32 %v2763_v25, %v2650_v45  ;;  %v494_v31 = vsub.f32 %v2763_v25, %v2637_v52  ;;  %v495_v53 = vsub.f32 %v2763_v25, %v2661_v49  ;;  %v497_v45 = vsub.f32 %v2763_v25, %v2647_v41 }
  0xc7   :  { %v2749_v57 = vpop.permute.xlu1 %481  ;;  %v498_v34 = vsub.f32 %v2763_v25, %v2658_v54  ;;  %v500_v41 = vsub.f32 %v2763_v25, %v2666_v23 }
  0xc8   :  { %1649 = vperm.xlu1 %1785, %v1523_v30   ;;  %v2754_v20 = vpop.permute.xlu0 %485  ;;  %v492_v30 = vsub.f32 %v2763_v25, %v2634_v40  ;;  %v496_v40 = vsub.f32 %v2763_v25, %v2642_v13  ;;  %v499_v13 = vsub.f32 %v2763_v25, %v2669_v6 }
  0xc9   :  { %1653 = vperm.xlu0 %1784, %v2561_v33  }
  0xcb   :  { %v2757_v37 = vpop.permute.xlu1 %489 }
  0xcc   :  { %1657 = vperm.xlu1 %1785, %v2566_v10   ;;  %v854_v47 = vpop.permute.xlu0 %853 }
  0xcd   :  { %v980_v10 = vmul.f32 %v854_v47, %v492_v30 }
  0xcf   :  { %v858_v61 = vpop.permute.xlu1 %857  ;;  %v1749_v8 = vmul.f32 -1.442695, %v980_v10 }
  0xd0   :  { %v862_v38 = vpop.permute.xlu0 %861  ;;  %v981_v62 = vmul.f32 %v858_v61, %v493_v60  ;;  %v501_v61 = vsub.f32 %v2763_v25, %v2655_v59 }
  0xd1   :  { %v982_v19 = vmul.f32 %v862_v38, %v494_v31  ;;  %1798 = vpow2.f32 %v1749_v8 }
  0xd2   :  { %v1750_v22 = vmul.f32 -1.442695, %v981_v62 }
  0xd3   :  { %v866_v3 = vpop.permute.xlu1 %865  ;;  %v1751_v11 = vmul.f32 -1.442695, %v982_v19 }
  0xd4   :  { %v870_v43 = vpop.permute.xlu0 %869  ;;  %v983_v24 = vmul.f32 %v866_v3, %v495_v53  ;;  %1800 = vpow2.f32 %v1750_v22 }
  0xd5   :  { %v984_v52 = vmul.f32 %v870_v43, %v496_v40  ;;  %1802 = vpow2.f32 %v1751_v11 }
  0xd6   :  { %v1752_v49 = vmul.f32 -1.442695, %v983_v24 }
  0xd7   :  { %v874_v12 = vpop.permute.xlu1 %873  ;;  %v1753_v51 = vmul.f32 -1.442695, %v984_v52 }
  0xd8   :  { %v878_v21 = vpop.permute.xlu0 %877  ;;  %v985_v44 = vmul.f32 %v874_v12, %v497_v45  ;;  %1804 = vpow2.f32 %v1752_v49  ;;  %v502_v12 = vsub.f32 %v2763_v25, %v2674_v42  ;;  %v504_v45 = vsub.f32 %v2763_v25, %v2682_v15 }
  0xd9   :  { %v986_v4 = vmul.f32 %v878_v21, %v498_v34  ;;  %1806 = vpow2.f32 %v1753_v51  ;;  %v505_v51 = vsub.f32 %v2763_v25, %v2687_v46 }
  0xda   :  { %v1754_v28 = vmul.f32 -1.442695, %v985_v44 }
  0xdb   :  { %v882_v33 = vpop.permute.xlu1 %881  ;;  %v1755_v38 = vmul.f32 -1.442695, %v986_v4  ;;  %v1799_v43 = vpop.eup %1798 }
  0xdc   :  { %v886_v56 = vpop.permute.xlu0 %885  ;;  %v987_v47 = vmul.f32 %v882_v33, %v499_v13  ;;  %1808 = vpow2.f32 %v1754_v28  ;;  %v1108_v31 = vadd.f32 1.0, %v1799_v43  ;;  %v506_v28 = vsub.f32 %v2763_v25, %v2690_v17 }
  0xdd   :  { %v988_v3 = vmul.f32 %v886_v56, %v500_v41  ;;  %1810 = vpow2.f32 %v1755_v38  ;;  %v503_v56 = vsub.f32 %v2763_v25, %v2679_v48 }
  0xde   :  { %v1756_v21 = vmul.f32 -1.442695, %v987_v47  ;;  %v1801_v33 = vpop.eup %1800 }
  0xdf   :  { %v890_v16 = vpop.permute.xlu1 %889  ;;  %v1757_v60 = vmul.f32 -1.442695, %v988_v3  ;;  %v1803_v62 = vpop.eup %1802  ;;  %v1109_v8 = vadd.f32 1.0, %v1801_v33 }
  0xe0   :  { %v894_v2 = vpop.permute.xlu0 %893  ;;  %v989_v23 = vmul.f32 %v890_v16, %v501_v61  ;;  %1812 = vpow2.f32 %v1756_v21  ;;  %v1110_v22 = vadd.f32 1.0, %v1803_v62 }
  0xe1   :  { %v990_v10 = vmul.f32 %v894_v2, %v502_v12  ;;  %1814 = vpow2.f32 %v1757_v60 }
  0xe2   :  { %v1758_v53 = vmul.f32 -1.442695, %v989_v23  ;;  %v1805_v19 = vpop.eup %1804  ;;  %1816 = vrcp.f32 %v1108_v31 }
  0xe3   :  { %v898_v14 = vpop.permute.xlu1 %897  ;;  %v1759_v16 = vmul.f32 -1.442695, %v990_v10  ;;  %v1807_v2 = vpop.eup %1806  ;;  %v1111_v48 = vadd.f32 1.0, %v1805_v19 }
  0xe4   :  { %v902_v18 = vpop.permute.xlu0 %901  ;;  %v991_v40 = vmul.f32 %v898_v14, %v503_v56  ;;  %1818 = vpow2.f32 %v1758_v53  ;;  %v1112_v44 = vadd.f32 1.0, %v1807_v2 }
  0xe5   :  { %1820 = vrcp.f32 %v1109_v8  ;;  %v992_v49 = vmul.f32 %v902_v18, %v504_v45 }
  0xe6   :  { %v1809_v52 = vpop.eup %1808  ;;  %1822 = vpow2.f32 %v1759_v16  ;;  %v1760_v34 = vmul.f32 -1.442695, %v991_v40 }
  0xe7   :  { %v2779_v27 = vpop.permute.xlu1 %905  ;;  %1824 = vrcp.f32 %v1110_v22  ;;  %v1811_v13 = vpop.eup %1810  ;;  %v1113_v4 = vadd.f32 1.0, %v1809_v52  ;;  %v1761_v47 = vmul.f32 -1.442695, %v992_v49 }
  0xe8   :  { %v2783_v9 = vpop.permute.xlu0 %909  ;;  %1826 = vrcp.f32 %v1111_v48  ;;  %v993_v18 = vmul.f32 %v2779_v27, %v505_v51  ;;  %v1114_v61 = vadd.f32 1.0, %v1811_v13  ;;  %v507_v27 = vsub.f32 %v2763_v25, %v2693_v63 }
  0xe9   :  { %1828 = vpow2.f32 %v1760_v34  ;;  %v994_v43 = vmul.f32 %v2783_v9, %v506_v28  ;;  %v508_v63 = vsub.f32 %v2763_v25, %v2698_v29 }
  0xea   :  { %v1813_v41 = vpop.eup %1812  ;;  %1830 = vrcp.f32 %v1112_v44  ;;  %v1762_v33 = vmul.f32 -1.442695, %v993_v18 }
  0xeb   :  { %v2787_v54 = vpop.permute.xlu1 %913  ;;  %v1815_v3 = vpop.eup %1814  ;;  %1832 = vrcp.f32 %v1113_v4  ;;  %v1115_v12 = vadd.f32 1.0, %v1813_v41  ;;  %v1763_v62 = vmul.f32 -1.442695, %v994_v43 }
  0xec   :  { %v2791_v6 = vpop.permute.xlu0 %917  ;;  %v1817_v46 = vpop.eup %1816  ;;  %1834 = vpow2.f32 %v1761_v47  ;;  %v1116_v17 = vadd.f32 1.0, %v1815_v3  ;;  %v995_v16 = vmul.f32 %v2787_v54, %v507_v27  ;;  %v509_v47 = vsub.f32 %v2763_v25, %v2701_v32 }
  0xed   :  { %1836 = vrcp.f32 %v1114_v61  ;;  %v996_v4 = vmul.f32 %v2791_v6, %v508_v63  ;;  %v511_v27 = vsub.f32 %v2763_v25, %v2709_v39  ;;  %v513_v39 = vsub.f32 %v2763_v25, %v2717_v7 }
  0xee   :  { %v1819_v23 = vpop.eup %1818  ;;  %1838 = vrcp.f32 %v1115_v12  ;;  %v1764_v51 = vmul.f32 -1.442695, %v995_v16  ;;  %v510_v12 = vsub.f32 %v2763_v25, %v2706_v50  ;;  %v515_v7 = vsub.f32 %v2763_v25, %v2725_v58 }
  0xef   :  { %v2795_v30 = vpop.permute.xlu1 %921  ;;  %v1821_v60 = vpop.eup %1820  ;;  %v1117_v9 = vadd.f32 1.0, %v1819_v23  ;;  %1840 = vpow2.f32 %v1762_v33  ;;  %v1765_v6 = vmul.f32 -1.442695, %v996_v4  ;;  %v517_v58 = vsub.f32 %v2763_v25, %v2733_v35 }
  0xf0   :  { %v2797_v59 = vpop.permute.xlu0 %925  ;;  %v1823_v31 = vpop.eup %1822  ;;  %1842 = vrcp.f32 %v1116_v17  ;;  %v519_v35 = vsub.f32 %v2763_v25, %v2741_v36 }
  0xf1   :  { %v1825_v8 = vpop.eup %1824  ;;  %v1118_v45 = vadd.f32 1.0, %v1823_v31  ;;  %1844 = vpow2.f32 %v1763_v62  ;;  %v998_v62 = vmul.f32 %v2797_v59, %v510_v12 }
  0xf2   :  { %v1827_v2 = vpop.eup %1826  ;;  %1846 = vrcp.f32 %v1117_v9 }
  0xf3   :  { %v2801_v42 = vpop.permute.xlu1 %929  ;;  %v1829_v52 = vpop.eup %1828  ;;  %1848 = vrcp.f32 %v1118_v45 }
  0xf4   :  { %v2803_v24 = vpop.permute.xlu0 %933  ;;  %v1831_v44 = vpop.eup %1830  ;;  %v1119_v18 = vadd.f32 1.0, %v1829_v52  ;;  %1850 = vpow2.f32 %v1764_v51  ;;  %v999_v16 = vmul.f32 %v2801_v42, %v511_v27 }
  0xf5   :  { %v1833_v28 = vpop.eup %1832 }
  0xf6   :  { %v1835_v3 = vpop.eup %1834  ;;  %1852 = vrcp.f32 %v1119_v18 }
  0xf7   :  { %v2807_v11 = vpop.permute.xlu1 %937  ;;  %v1120_v32 = vadd.f32 1.0, %v1835_v3  ;;  %1854 = vpow2.f32 %v1765_v6 }
  0xf8   :  { %v2809_v14 = vpop.permute.xlu0 %941 }
  0xf9   :  { %1856 = vrcp.f32 %v1120_v32 }
  0xfb   :  { %v2813_v15 = vpop.permute.xlu1 %945 }
  0xfc   :  { %v2818_v38 = vpop.permute.xlu0 %949 }
  0xff   :  { %v1534_v21 = vpop.permute.xlu1 %1533 }
 0x100   :  { %v1538_v10 = vpop.permute.xlu0 %1537  ;;  %v1660_v56 = vmul.f32 %v1817_v46, %v1534_v21  ;;  %v1837_v46 = vpop.eup %1836  ;;  %v997_v21 = vmul.f32 %v2795_v30, %v509_v47  ;;  %v512_v30 = vsub.f32 %v2763_v25, %v2712_v1 }
 0x101   :  { %v1661_v53 = vmul.f32 %v1821_v60, %v1538_v10  ;;  %v1839_v17 = vpop.eup %1838 }
 0x102   :  { %v1841_v31 = vpop.eup %1840  ;;  %v1000_v52 = vmul.f32 %v2803_v24, %v512_v30 }
 0x103   :  { %v1542_v19 = vpop.permute.xlu1 %1541  ;;  %v1692_v40 = vadd.f32 %v1661_v53, %v1660_v56  ;;  %v1843_v50 = vpop.eup %1842  ;;  %v1121_v59 = vadd.f32 1.0, %v1841_v31 }
 0x104   :  { %v1662_v22 = vmul.f32 %v1825_v8, %v1542_v19  ;;  %v1546_v48 = vpop.permute.xlu0 %1545  ;;  %v1766_v8 = vmul.f32 -1.442695, %v997_v21  ;;  %v1845_v19 = vpop.eup %1844 }
 0x105   :  { %v1663_v49 = vmul.f32 %v1827_v2, %v1546_v48  ;;  %v1847_v2 = vpop.eup %1846  ;;  %v1767_v48 = vmul.f32 -1.442695, %v998_v62 }
 0x106   :  { %v1693_v34 = vadd.f32 %v1692_v40, %v1662_v22  ;;  %1858 = vpow2.f32 %v1766_v8 }
 0x107   :  { %v1550_v13 = vpop.permute.xlu1 %1549  ;;  %1860 = vrcp.f32 %v1121_v59 }
 0x108   :  { %v1694_v54 = vadd.f32 %v1693_v34, %v1663_v49  ;;  %v1664_v41 = vmul.f32 %v1831_v44, %v1550_v13  ;;  %v1554_v61 = vpop.permute.xlu0 %1553  ;;  %v1849_v34 = vpop.eup %1848  ;;  %v514_v49 = vsub.f32 %v2763_v25, %v2722_v55  ;;  %v1768_v44 = vmul.f32 -1.442695, %v999_v16 }
 0x109   :  { %v1665_v43 = vmul.f32 %v1833_v28, %v1554_v61  ;;  %v1001_v13 = vmul.f32 %v2807_v11, %v513_v39  ;;  %v1851_v24 = vpop.eup %1850  ;;  %1862 = vpow2.f32 %v1767_v48  ;;  %v1769_v28 = vmul.f32 -1.442695, %v1000_v52 }
 0x10a   :  { %v1695_v29 = vadd.f32 %v1694_v54, %v1664_v41  ;;  %v1122_v54 = vadd.f32 1.0, %v1845_v19  ;;  %v1002_v47 = vmul.f32 %v2809_v14, %v514_v49  ;;  %v1853_v55 = vpop.eup %1852  ;;  %v516_v61 = vsub.f32 %v2763_v25, %v2728_v0 }
 0x10b   :  { %v1558_v23 = vpop.permute.xlu1 %1557  ;;  %1864 = vpow2.f32 %v1768_v44  ;;  %v1770_v11 = vmul.f32 -1.442695, %v1001_v13  ;;  %v1855_v21 = vpop.eup %1854  ;;  %v518_v0 = vsub.f32 %v2763_v25, %v2738_v26  ;;  %v520_v26 = vsub.f32 %v2763_v25, %v2744_v5 }
 0x10c   :  { %v1696_v33 = vadd.f32 %v1695_v29, %v1665_v43  ;;  %v1666_v60 = vmul.f32 %v1837_v46, %v1558_v23  ;;  %v1562_v10 = vpop.permute.xlu0 %1561  ;;  %v1003_v29 = vmul.f32 %v2813_v15, %v515_v7  ;;  %1866 = vrcp.f32 %v1122_v54 }
 0x10d   :  { %v1667_v53 = vmul.f32 %v1839_v17, %v1562_v10  ;;  %v1123_v46 = vadd.f32 1.0, %v1851_v24  ;;  %1868 = vpow2.f32 %v1769_v28  ;;  %v1771_v14 = vmul.f32 -1.442695, %v1002_v47 }
 0x10e   :  { %v1697_v56 = vadd.f32 %v1696_v33, %v1666_v60  ;;  %v1004_v23 = vmul.f32 %v2818_v38, %v516_v61  ;;  %v1857_v33 = vpop.eup %1856  ;;  %1870 = vpow2.f32 %v1770_v11  ;;  %v1772_v15 = vmul.f32 -1.442695, %v1003_v29 }
 0x10f   :  { %v1566_v9 = vpop.permute.xlu1 %1565  ;;  %1872 = vrcp.f32 %v1123_v46  ;;  %v1124_v31 = vadd.f32 1.0, %v1855_v21  ;;  %v521_v5 = vsub.f32 %v2763_v25, %v2749_v57  ;;  %v522_v24 = vsub.f32 %v2763_v25, %v2754_v20 }
 0x110   :  { %v1698_v40 = vadd.f32 %v1697_v56, %v1667_v53  ;;  %v1668_v22 = vmul.f32 %v1843_v50, %v1566_v9  ;;  %v1570_v45 = vpop.permute.xlu0 %1569  ;;  %v1859_v10 = vpop.eup %1858  ;;  %1874 = vpow2.f32 %v1771_v14  ;;  %v1773_v62 = vmul.f32 -1.442695, %v1004_v23 }
 0x111   :  { %v1669_v1 = vmul.f32 %v1847_v2, %v1570_v45  ;;  %v1861_v53 = vpop.eup %1860  ;;  %1876 = vpow2.f32 %v1772_v15  ;;  %v1125_v16 = vadd.f32 1.0, %v1859_v10  ;;  %v523_v46 = vsub.f32 %v2763_v25, %v2757_v37 }
 0x112   :  { %v1699_v63 = vadd.f32 %v1698_v40, %v1668_v22  ;;  %1878 = vrcp.f32 %v1124_v31 }
 0x113   :  { %v1574_v42 = vpop.permute.xlu1 %1573  ;;  %v1863_v30 = vpop.eup %1862  ;;  %1880 = vpow2.f32 %v1773_v62 }
 0x114   :  { %v1700_v51 = vadd.f32 %v1699_v63, %v1669_v1  ;;  %v1670_v4 = vmul.f32 %v1849_v34, %v1574_v42  ;;  %v954_v41 = vpop.permute.xlu0 %953  ;;  %v1126_v45 = vadd.f32 1.0, %v1863_v30 }
 0x115   :  { %v1005_v17 = vmul.f32 %v954_v41, %v517_v58  ;;  %v1865_v40 = vpop.eup %1864 }
 0x116   :  { %v1701_v18 = vadd.f32 %v1700_v51, %v1670_v4  ;;  %v1867_v59 = vpop.eup %1866  ;;  %v1127_v34 = vadd.f32 1.0, %v1865_v40 }
 0x117   :  { %v1578_v3 = vpop.permute.xlu1 %1577  ;;  %v1774_v8 = vmul.f32 -1.442695, %v1005_v17  ;;  %v1869_v52 = vpop.eup %1868 }
 0x118   :  { %v1671_v43 = vmul.f32 %v1853_v55, %v1578_v3  ;;  %v958_v12 = vpop.permute.xlu0 %957  ;;  %v1871_v42 = vpop.eup %1870  ;;  %v1128_v7 = vadd.f32 1.0, %v1869_v52 }
 0x119   :  { %v1006_v38 = vmul.f32 %v958_v12, %v518_v0  ;;  %1882 = vpow2.f32 %v1774_v8  ;;  %v1873_v4 = vpop.eup %1872  ;;  %v1129_v47 = vadd.f32 1.0, %v1871_v42 }
 0x11a   :  { %v1702_v6 = vadd.f32 %v1701_v18, %v1671_v43  ;;  %1884 = vrcp.f32 %v1125_v16  ;;  %v1875_v41 = vpop.eup %1874 }
 0x11b   :  { %v1582_v60 = vpop.permute.xlu1 %1581  ;;  %v1775_v22 = vmul.f32 -1.442695, %v1006_v38  ;;  %v1877_v55 = vpop.eup %1876  ;;  %v1130_v29 = vadd.f32 1.0, %v1875_v41 }
 0x11c   :  { %v1672_v32 = vmul.f32 %v1857_v33, %v1582_v60  ;;  %v962_v27 = vpop.permute.xlu0 %961  ;;  %v1879_v11 = vpop.eup %1878  ;;  %v1131_v21 = vadd.f32 1.0, %v1877_v55 }
 0x11d   :  { %v1007_v9 = vmul.f32 %v962_v27, %v519_v35  ;;  %1886 = vpow2.f32 %v1775_v22  ;;  %v1881_v58 = vpop.eup %1880 }
 0x11e   :  { %v1703_v56 = vadd.f32 %v1702_v6, %v1672_v32  ;;  %1888 = vrcp.f32 %v1126_v45  ;;  %v1132_v60 = vadd.f32 1.0, %v1881_v58 }
 0x11f   :  { %v1586_v50 = vpop.permute.xlu1 %1585  ;;  %v1776_v63 = vmul.f32 -1.442695, %v1007_v9 }
 0x120   :  { %v1673_v19 = vmul.f32 %v1861_v53, %v1586_v50  ;;  %v966_v36 = vpop.permute.xlu0 %965 }
 0x121   :  { %v1008_v39 = vmul.f32 %v966_v36, %v520_v26  ;;  %1890 = vpow2.f32 %v1776_v63 }
 0x122   :  { %v1704_v2 = vadd.f32 %v1703_v56, %v1673_v19  ;;  %1892 = vrcp.f32 %v1127_v34 }
 0x123   :  { %v1590_v48 = vpop.permute.xlu1 %1589  ;;  %v1777_v44 = vmul.f32 -1.442695, %v1008_v39  ;;  %v1883_v23 = vpop.eup %1882 }
 0x124   :  { %v1674_v1 = vmul.f32 %v1867_v59, %v1590_v48  ;;  %v970_v49 = vpop.permute.xlu0 %969  ;;  %v1885_v0 = vpop.eup %1884  ;;  %v1133_v37 = vadd.f32 1.0, %v1883_v23 }
 0x125   :  { %v1009_v51 = vmul.f32 %v970_v49, %v521_v5  ;;  %1894 = vpow2.f32 %v1777_v44 }
 0x126   :  { %v1705_v13 = vadd.f32 %v1704_v2, %v1674_v1  ;;  %1896 = vrcp.f32 %v1128_v7 }
 0x127   :  { %v1594_v54 = vpop.permute.xlu1 %1593  ;;  %v1778_v57 = vmul.f32 -1.442695, %v1009_v51  ;;  %v1887_v17 = vpop.eup %1886 }
 0x128   :  { %v1675_v28 = vmul.f32 %v1873_v4, %v1594_v54  ;;  %v974_v18 = vpop.permute.xlu0 %973  ;;  %v1889_v35 = vpop.eup %1888  ;;  %v1134_v56 = vadd.f32 1.0, %v1887_v17 }
 0x129   :  { %v1010_v3 = vmul.f32 %v974_v18, %v522_v24  ;;  %1898 = vpow2.f32 %v1778_v57 }
 0x12a   :  { %v1706_v61 = vadd.f32 %v1705_v13, %v1675_v28  ;;  %1900 = vrcp.f32 %v1129_v47 }
 0x12b   :  { %v1598_v43 = vpop.permute.xlu1 %1597  ;;  %v1779_v20 = vmul.f32 -1.442695, %v1010_v3  ;;  %v1891_v31 = vpop.eup %1890 }
 0x12c   :  { %v1676_v12 = vmul.f32 %v1879_v11, %v1598_v43  ;;  %v978_v14 = vpop.permute.xlu0 %977  ;;  %v1893_v38 = vpop.eup %1892  ;;  %v1135_v9 = vadd.f32 1.0, %v1891_v31 }
 0x12d   :  { %1902 = vpow2.f32 %v1779_v20  ;;  %v1011_v33 = vmul.f32 %v978_v14, %v523_v46 }
 0x12e   :  { %v1707_v6 = vadd.f32 %v1706_v61, %v1676_v12  ;;  %1904 = vrcp.f32 %v1130_v29 }
 0x12f   :  { %v1602_v15 = vpop.permute.xlu1 %1601  ;;  %v1780_v32 = vmul.f32 -1.442695, %v1011_v33  ;;  %1906 = vrcp.f32 %v1131_v21  ;;  %v1895_v26 = vpop.eup %1894 }
 0x130   :  { %v1677_v10 = vmul.f32 %v1885_v0, %v1602_v15  ;;  %v1606_v25 = vpop.permute.xlu0 %1605  ;;  %v1897_v8 = vpop.eup %1896  ;;  %v1136_v2 = vadd.f32 1.0, %v1895_v26 }
 0x131   :  { %1908 = vpow2.f32 %v1780_v32  ;;  %v1678_v62 = vmul.f32 %v1889_v35, %v1606_v25 }
 0x132   :  { %v1708_v27 = vadd.f32 %v1707_v6, %v1677_v10  ;;  %1910 = vrcp.f32 %v1132_v60 }
 0x133   :  { %v1610_v53 = vpop.permute.xlu1 %1609  ;;  %1912 = vrcp.f32 %v1133_v37  ;;  %v1899_v16 = vpop.eup %1898 }
 0x134   :  { %v1709_v50 = vadd.f32 %v1708_v27, %v1678_v62  ;;  %v1679_v30 = vmul.f32 %v1893_v38, %v1610_v53  ;;  %v1614_v19 = vpop.permute.xlu0 %1613  ;;  %v1901_v22 = vpop.eup %1900  ;;  %1914 = vrcp.f32 %v1134_v56  ;;  %v1137_v5 = vadd.f32 1.0, %v1899_v16 }
 0x135   :  { %v1680_v40 = vmul.f32 %v1897_v8, %v1614_v19  ;;  %1916 = vrcp.f32 %v1135_v9  ;;  %v1723_v27 = vstv %s2884_s4 }
 0x136   :  { %v1710_v36 = vadd.f32 %v1709_v50, %v1679_v30  ;;  %1918 = vrcp.f32 %v1136_v2 }
 0x137   :  { %v1618_v39 = vpop.permute.xlu1 %1617  ;;  %v1903_v59 = vpop.eup %1902  ;;  %1920 = vrcp.f32 %v1137_v5 }
 0x138   :  { %v1711_v45 = vadd.f32 %v1710_v36, %v1680_v40  ;;  %v1681_v48 = vmul.f32 %v1901_v22, %v1618_v39  ;;  %v1905_v52 = vpop.eup %1904  ;;  %v1622_v63 = vpop.permute.xlu0 %1621  ;;  %v1138_v42 = vadd.f32 1.0, %v1903_v59 }
 0x139   :  { %v1682_v34 = vmul.f32 %v1905_v52, %v1622_v63  ;;  %v1907_v49 = vpop.eup %1906 }
 0x13a   :  { %v1712_v1 = vadd.f32 %v1711_v45, %v1681_v48  ;;  %1922 = vrcp.f32 %v1138_v42 }
 0x13b   :  { %v1626_v44 = vpop.permute.xlu1 %1625  ;;  %v1909_v13 = vpop.eup %1908 }
 0x13c   :  { %v1713_v51 = vadd.f32 %v1712_v1, %v1682_v34  ;;  %v1683_v4 = vmul.f32 %v1907_v49, %v1626_v44  ;;  %v1911_v7 = vpop.eup %1910  ;;  %v1139_v54 = vadd.f32 1.0, %v1909_v13  ;;  %v1630_v41 = vpop.permute.xlu0 %1629 }
 0x13d   :  { %v1684_v57 = vmul.f32 %v1911_v7, %v1630_v41  ;;  %v1913_v28 = vpop.eup %1912 }
 0x13e   :  { %v1714_v24 = vadd.f32 %v1713_v51, %v1683_v4  ;;  %v1915_v61 = vpop.eup %1914  ;;  %1924 = vrcp.f32 %v1139_v54 }
 0x13f   :  { %v1634_v47 = vpop.permute.xlu1 %1633  ;;  %v1917_v43 = vpop.eup %1916 }
 0x140   :  { %v1715_v18 = vadd.f32 %v1714_v24, %v1684_v57  ;;  %v1685_v55 = vmul.f32 %v1913_v28, %v1634_v47  ;;  %v1638_v3 = vpop.permute.xlu0 %1637  ;;  %v1919_v12 = vpop.eup %1918 }
 0x141   :  { %v1686_v29 = vmul.f32 %v1915_v61, %v1638_v3  ;;  %v1921_v6 = vpop.eup %1920 }
 0x142   :  { %v1716_v11 = vadd.f32 %v1715_v18, %v1685_v55 }
 0x143   :  { %v1642_v58 = vpop.permute.xlu1 %1641 }
 0x144   :  { %v1717_v46 = vadd.f32 %v1716_v11, %v1686_v29  ;;  %v1687_v20 = vmul.f32 %v1917_v43, %v1642_v58  ;;  %v1646_v21 = vpop.permute.xlu0 %1645  ;;  %v1923_v15 = vpop.eup %1922 }
 0x145   :  { %v1688_v23 = vmul.f32 %v1919_v12, %v1646_v21 }
 0x146   :  { %v1718_v14 = vadd.f32 %v1717_v46, %v1687_v20 }
 0x147   :  { %v1650_v33 = vpop.permute.xlu1 %1649 }
 0x148   :  { %v1719_v0 = vadd.f32 %v1718_v14, %v1688_v23  ;;  %v1689_v60 = vmul.f32 %v1921_v6, %v1650_v33  ;;  %v1654_v17 = vpop.permute.xlu0 %1653  ;;  %v1925_v35 = vpop.eup %1924 }
 0x149   :  { %v1690_v10 = vmul.f32 %v1923_v15, %v1654_v17 }
 0x14a   :  { %v1720_v32 = vadd.f32 %v1719_v0, %v1689_v60 }
 0x14b   :  { %v1658_v37 = vpop.permute.xlu1 %1657 }
 0x14c   :  { %v1721_v25 = vadd.f32 %v1720_v32, %v1690_v10  ;;  %v1691_v31 = vmul.f32 %v1925_v35, %v1658_v37 }
 0x14e   :  { %v1722_v62 = vadd.f32 %v1721_v25, %v1691_v31 }
 0x150   :  { %v1724_v38 = vadd.f32 %v1723_v27, %v1722_v62 }
 0x152   :  { %v1725_v56 = vrot.slane %v1724_v38, 4 }
 0x154   :  { %v1726_v53 = vadd.f32 %v1725_v56, %v1724_v38 }
 0x156   :  { %v1727_v26 = vrot.slane %v1726_v53, 2 }
 0x158   :  { %v1728_v50 = vadd.f32 %v1727_v26, %v1726_v53 }
 0x15a   :  { %v1729_v30 = vrot.slane %v1728_v50, 1 }
 0x15c   :  { %v1730_v8 = vadd.f32 %v1729_v30, %v1728_v50 }
 0x15e   :  { %v1731_v9 = vmul.f32 2.0, %v1730_v8 }
 0x160   :  { %1926 = vrcp.f32 %v1731_v9 }
 0x16a   :  { %v1927_v19 = vpop.eup %1926 }
 0x16b   :  { %v1733_v16 = vmul.f32 %v1927_v19, %v1724_v38 }
 0x16d   :  { %1734 = vst [vmem:[#allocation3] sm:$0xff] %v1733_v16 }
 0x16e   :  { %1939 = shalt.err (!%p1936_p4)
}
 0x16f   :  { %s1940_s21 = scalar_lea.hbm %s2885_s5, 128 }
 0x170   :  { %p1941_p5 = scmp.ne.s32.totalorder %s2885_s5, %s1940_s21  ;;  %p1944_p6 = scmp.lt.u32.totalorder %s1940_s21, %s2885_s5 }
 0x172   :  { %p1946_p7 = pnand %p1944_p6, %p1941_p5 }
 0x174   :  { %1949 = shalt.err (!%p1946_p7)
}
 0x175   :  { %1744 = dma.vmem_to_hbm [thread:$0]  %s1742_s18, 128, %s2885_s5, [#allocation4]  }
 0x176   :  { %1950 = dma.done.wait [#allocation4], 128  }
 0x177   :  { %1951 = vsyncadd [#allocation4], 4294967168 }
 0x178   :  { %1748 = vsyncpa [#allocation4], 1 }

</bundles_post_ra>
